<compile_context>
chip_gen: v7x
topology: tpu7x:2x2x1
jax: 0.10.0
libtpu: 0.0.40
codegen_flags: <defaults>
</compile_context>

<pallas_src>
import functools

import jax
import jax.numpy as jnp
from jax.experimental import pallas as pl
from jax.experimental.pallas import tpu as pltpu


def _round_up(x, m):
    return (x + m - 1) // m * m


def _contrast_loss_kernel(tok_i_ref, tok_j_ref, lab_i_ref, lab_j_ref, out_ref,
                          *, alpha, n, tile, matmul_dtype, needs_mask):
    i = pl.program_id(0)
    j = pl.program_id(1)

    # Output block depends only on i -> resident accumulator across j.
    @pl.when(j == 0)
    def _():
        out_ref[...] = jnp.zeros_like(out_ref)

    # Normalize each row: x / max(||x||, eps)  ==  x * rsqrt(max(||x||^2, eps^2)).
    t_i = tok_i_ref[...].astype(jnp.float32)                       # (T, Dp)
    t_j = tok_j_ref[...].astype(jnp.float32)                       # (T, Dp)
    inv_i = jax.lax.rsqrt(
        jnp.maximum(jnp.sum(t_i * t_i, axis=-1, keepdims=True), 1e-24))
    inv_j = jax.lax.rsqrt(
        jnp.maximum(jnp.sum(t_j * t_j, axis=-1, keepdims=True), 1e-24))
    tn_i = (t_i * inv_i).astype(matmul_dtype)
    tn_j = (t_j * inv_j).astype(matmul_dtype)

    # Pairwise cosine similarity: contract feature dim of both operands
    # directly on the MXU (no explicit transpose), f32 accumulation.
    sim = jax.lax.dot_general(
        tn_i, tn_j,
        dimension_numbers=(((1,), (1,)), ((), ())),
        preferred_element_type=jnp.float32)                        # (T, T)

    # label_matrix = labels[:, None] + labels[None, :]  (integer broadcast add).
    lab_sum = lab_i_ref[...] + lab_j_ref[...]                      # (T,1)+(1,T) -> (T,T)

    loss = jnp.where(lab_sum != 1,
                     1.0 - sim,
                     jnp.maximum(sim - alpha, 0.0))

    if needs_mask:  # static (trace-time) — only emitted when padding exists.
        row_ids = jax.lax.broadcasted_iota(jnp.int32, (tile, tile), 0) + i * tile
        col_ids = jax.lax.broadcasted_iota(jnp.int32, (tile, tile), 1) + j * tile
        loss = jnp.where((row_ids < n) & (col_ids < n), loss, 0.0)

    # Lane-dense per-row-tile partial: reduce over sublanes only; final tiny
    # cross-lane/tile reduction happens in the wrapper.
    partial = jnp.sum(loss, axis=0, keepdims=True)                 # (1, T)
    out_ref[...] += partial[None]                                  # (1, 1, T)


def binary_token_contrast_loss(tokens, labels, alpha=0.3, *, tile=256,
                               matmul_dtype=jnp.float32):
    """tokens: [N, D] float, labels: [N] int (binary). Returns scalar f32 mean loss.

    matmul_dtype=jnp.bfloat16 enables the 2x-throughput MXU path (f32 accumulate);
    default f32 keeps exact parity with the PyTorch reference.
    """
    assert tokens.ndim == 2
    assert tokens.shape[0] == labels.shape[0]
    n, d = tokens.shape

    # Tile size: multiple of 128 (lane / MXU friendly), capped by `tile`.
    t = max(128, _round_up(min(tile, _round_up(n, 128)), 128))
    n_pad = _round_up(n, t)
    d_pad = _round_up(d, 128)

    tok = tokens
    if (n_pad, d_pad) != (n, d):
        tok = jnp.pad(tok, ((0, n_pad - n), (0, d_pad - d)))
    lab = labels.astype(jnp.int32)
    if n_pad != n:
        lab = jnp.pad(lab, (0, n_pad - n))
    lab_col = lab.reshape(n_pad, 1)   # column orientation (no in-kernel transpose)
    lab_row = lab.reshape(1, n_pad)   # row orientation

    n_tiles = n_pad // t
    kernel = functools.partial(
        _contrast_loss_kernel,
        alpha=float(alpha), n=n, tile=t,
        matmul_dtype=matmul_dtype, needs_mask=(n_pad != n))

    partials = pl.pallas_call(
        kernel,
        out_shape=jax.ShapeDtypeStruct((n_tiles, 1, t), jnp.float32),
        grid=(n_tiles, n_tiles),
        in_specs=[
            pl.BlockSpec((t, d_pad), lambda i, j: (i, 0)),   # row-tile of tokens
            pl.BlockSpec((t, d_pad), lambda i, j: (j, 0)),   # col-tile of tokens
            pl.BlockSpec((t, 1), lambda i, j: (i, 0)),       # labels, column form
            pl.BlockSpec((1, t), lambda i, j: (0, j)),       # labels, row form
        ],
        out_specs=pl.BlockSpec((1, 1, t), lambda i, j: (i, 0, 0)),
        compiler_params=pltpu.CompilerParams(
            dimension_semantics=("parallel", "arbitrary"),
            vmem_limit_bytes=64 * 1024 * 1024),
    )(tok, tok, lab_col, lab_row)

    return jnp.sum(partials) / (n * n)


def _reference(tokens, labels, alpha=0.3):
    tkn = tokens.astype(jnp.float32)
    norm = jnp.sqrt(jnp.sum(tkn * tkn, axis=-1, keepdims=True))
    tn = tkn / jnp.maximum(norm, 1e-12)
    sim = tn @ tn.T
    lab = labels.astype(jnp.float32)
    lm = lab[:, None] + lab[None, :]
    loss = jnp.where(lm != 1.0, 1.0 - sim, jnp.maximum(sim - alpha, 0.0))
    return jnp.mean(loss)


if __name__ == "__main__":
    key = jax.random.PRNGKey(0)
    k1, k2 = jax.random.split(key)

    # Small shapes consistent with the module's forward: tokens [N, D], labels [N].
    N, D = 8, 32
    tokens = jax.random.normal(k1, (N, D), dtype=jnp.float32)
    labels = jax.random.bernoulli(k2, 0.5, (N,)).astype(jnp.int32)

    # f32 path: exact semantics.
    out = jax.block_until_ready(binary_token_contrast_loss(tokens, labels, alpha=0.3))
    ref = _reference(tokens, labels, alpha=0.3)
    assert jnp.allclose(out, ref, atol=1e-5, rtol=1e-5), (out, ref)

    # bf16 MXU path (2x throughput), f32 accumulation — relaxed tolerance.
    out_bf16 = jax.block_until_ready(
        binary_token_contrast_loss(tokens, labels, alpha=0.3,
                                   matmul_dtype=jnp.bfloat16))
    assert jnp.allclose(out_bf16, ref, atol=2e-2, rtol=0.0), (out_bf16, ref)

    # Multi-tile path with padding/masking (N, D not tile-aligned).
    N2, D2 = 200, 96
    tokens2 = jax.random.normal(k1, (N2, D2), dtype=jnp.float32)
    labels2 = jax.random.bernoulli(k2, 0.5, (N2,)).astype(jnp.int32)
    out2 = jax.block_until_ready(
        binary_token_contrast_loss(tokens2, labels2, alpha=0.3, tile=128))
    ref2 = _reference(tokens2, labels2, alpha=0.3)
    assert jnp.allclose(out2, ref2, atol=1e-4, rtol=1e-4), (out2, ref2)

    print("KERNEL_OK")
</pallas_src>

<mosaic_0001>
module attributes {stable_mosaic.version = 11 : i64} {
  func.func @_contrast_loss_kernel(%arg0: i32, %arg1: i32, %arg2: memref<128x128xf32, #tpu.memory_space<vmem>>, %arg3: memref<128x128xf32, #tpu.memory_space<vmem>>, %arg4: memref<128x1xi32, #tpu.memory_space<vmem>>, %arg5: memref<1x128xi32, #tpu.memory_space<vmem>>, %arg6: memref<1x1x128xf32, #tpu.memory_space<vmem>>) attributes {dimension_semantics = [#tpu.dimension_semantics<parallel>, #tpu.dimension_semantics<arbitrary>], iteration_bounds = array<i64: 1, 1>, scalar_prefetch = 0 : i64, scratch_operands = 0 : i64, tpu.core_type = #tpu.core_type<tc>, window_params = [{transform_indices = @transform_0, window_bounds = array<i64: 128, 128>}, {transform_indices = @transform_1, window_bounds = array<i64: 128, 128>}, {transform_indices = @transform_2, window_bounds = array<i64: 128, 1>}, {transform_indices = @transform_3, window_bounds = array<i64: 1, 128>}, {transform_indices = @transform_4, window_bounds = array<i64: 1, 1, 128>}]} {
    %c0_i32 = arith.constant 0 : i32
    %0 = arith.cmpi eq, %arg1, %c0_i32 : i32
    %1 = arith.extui %0 : i1 to i32
    %c0_i32_0 = arith.constant 0 : i32
    %2 = arith.cmpi ne, %1, %c0_i32_0 : i32
    scf.if %2 {
      %cst_25 = arith.constant 0.000000e+00 : f32
      %57 = vector.broadcast %cst_25 : f32 to vector<1x1x128xf32>
      %c0_26 = arith.constant 0 : index
      %c0_27 = arith.constant 0 : index
      %c0_28 = arith.constant 0 : index
      %58 = vector.load %arg6[%c0_26, %c0_27, %c0_28] : memref<1x1x128xf32, #tpu.memory_space<vmem>>, vector<1x1x128xf32>
      tpu.vector_store %arg6[%c0_26, %c0_27, %c0_28], %57 {strides = array<i32>} : memref<1x1x128xf32, #tpu.memory_space<vmem>>, vector<1x1x128xf32>,
    } else {
    }
    %c0 = arith.constant 0 : index
    %c0_1 = arith.constant 0 : index
    %3 = vector.load %arg2[%c0, %c0_1] : memref<128x128xf32, #tpu.memory_space<vmem>>, vector<128x128xf32>
    %c0_2 = arith.constant 0 : index
    %c0_3 = arith.constant 0 : index
    %4 = vector.load %arg3[%c0_2, %c0_3] : memref<128x128xf32, #tpu.memory_space<vmem>>, vector<128x128xf32>
    %5 = arith.mulf %3, %3 : vector<128x128xf32>
    %cst = arith.constant dense<0.000000e+00> : vector<128xf32>
    %6 = vector.multi_reduction <add>, %5, %cst [1] : vector<128x128xf32> to vector<128xf32>
    %7 = vector.shape_cast %6 : vector<128xf32> to vector<128x1xf32>
    %cst_4 = arith.constant 1.000000e-24 : f32
    %8 = vector.broadcast %cst_4 : f32 to vector<128x1xf32>
    %9 = arith.maximumf %7, %8 : vector<128x1xf32>
    %10 = math.rsqrt %9 : vector<128x1xf32>
    %11 = arith.mulf %4, %4 : vector<128x128xf32>
    %cst_5 = arith.constant dense<0.000000e+00> : vector<128xf32>
    %12 = vector.multi_reduction <add>, %11, %cst_5 [1] : vector<128x128xf32> to vector<128xf32>
    %13 = vector.shape_cast %12 : vector<128xf32> to vector<128x1xf32>
    %cst_6 = arith.constant 1.000000e-24 : f32
    %14 = vector.broadcast %cst_6 : f32 to vector<128x1xf32>
    %15 = arith.maximumf %13, %14 : vector<128x1xf32>
    %16 = math.rsqrt %15 : vector<128x1xf32>
    %17 = vector.broadcast %10 : vector<128x1xf32> to vector<128x128xf32>
    %18 = arith.mulf %3, %17 : vector<128x128xf32>
    %19 = vector.broadcast %16 : vector<128x1xf32> to vector<128x128xf32>
    %20 = arith.mulf %4, %19 : vector<128x128xf32>
    %cst_7 = arith.constant dense<0.000000e+00> : vector<128x128xf32>
    %21 = tpu.matmul %18, %20, %cst_7 {dimension_numbers = #tpu.dot_dimension_numbers<[1], [1], [0], [0], [0, 0, 1, 0], [], []>} : vector<128x128xf32>, vector<128x128xf32>, vector<128x128xf32> -> vector<128x128xf32>
    %c0_8 = arith.constant 0 : index
    %c0_9 = arith.constant 0 : index
    %22 = vector.load %arg4[%c0_8, %c0_9] : memref<128x1xi32, #tpu.memory_space<vmem>>, vector<128x1xi32>
    %c0_10 = arith.constant 0 : index
    %c0_11 = arith.constant 0 : index
    %23 = vector.load %arg5[%c0_10, %c0_11] : memref<1x128xi32, #tpu.memory_space<vmem>>, vector<1x128xi32>
    %24 = vector.broadcast %22 : vector<128x1xi32> to vector<128x128xi32>
    %25 = vector.broadcast %23 : vector<1x128xi32> to vector<128x128xi32>
    %26 = arith.addi %24, %25 : vector<128x128xi32>
    %c1_i32 = arith.constant 1 : i32
    %27 = vector.broadcast %c1_i32 : i32 to vector<128x128xi32>
    %28 = arith.cmpi ne, %26, %27 : vector<128x128xi32>
    %cst_12 = arith.constant 1.000000e+00 : f32
    %29 = vector.broadcast %cst_12 : f32 to vector<128x128xf32>
    %30 = arith.subf %29, %21 : vector<128x128xf32>
    %cst_13 = arith.constant 3.000000e-01 : f32
    %31 = vector.broadcast %cst_13 : f32 to vector<128x128xf32>
    %32 = arith.subf %21, %31 : vector<128x128xf32>
    %cst_14 = arith.constant 0.000000e+00 : f32
    %33 = vector.broadcast %cst_14 : f32 to vector<128x128xf32>
    %34 = arith.maximumf %32, %33 : vector<128x128xf32>
    %35 = arith.select %28, %30, %34 : vector<128x128xi1>, vector<128x128xf32>
    %36 = tpu.iota {dimensions = array<i32: 0>} : vector<128x128xi32>
    %c128_i32 = arith.constant 128 : i32
    %37 = arith.muli %arg0, %c128_i32 : i32
    %38 = vector.broadcast %37 : i32 to vector<128x128xi32>
    %39 = arith.addi %36, %38 : vector<128x128xi32>
    %40 = tpu.iota {dimensions = array<i32: 1>} : vector<128x128xi32>
    %c128_i32_15 = arith.constant 128 : i32
    %41 = arith.muli %arg1, %c128_i32_15 : i32
    %42 = vector.broadcast %41 : i32 to vector<128x128xi32>
    %43 = arith.addi %40, %42 : vector<128x128xi32>
    %c8_i32 = arith.constant 8 : i32
    %44 = vector.broadcast %c8_i32 : i32 to vector<128x128xi32>
    %45 = arith.cmpi slt, %39, %44 : vector<128x128xi32>
    %c8_i32_16 = arith.constant 8 : i32
    %46 = vector.broadcast %c8_i32_16 : i32 to vector<128x128xi32>
    %47 = arith.cmpi slt, %43, %46 : vector<128x128xi32>
    %48 = arith.andi %45, %47 : vector<128x128xi1>
    %cst_17 = arith.constant 0.000000e+00 : f32
    %49 = vector.broadcast %cst_17 : f32 to vector<128x128xf32>
    %50 = arith.select %48, %35, %49 : vector<128x128xi1>, vector<128x128xf32>
    %cst_18 = arith.constant dense<0.000000e+00> : vector<128xf32>
    %51 = vector.multi_reduction <add>, %50, %cst_18 [0] : vector<128x128xf32> to vector<128xf32>
    %52 = vector.shape_cast %51 : vector<128xf32> to vector<1x128xf32>
    %c0_19 = arith.constant 0 : index
    %c0_20 = arith.constant 0 : index
    %c0_21 = arith.constant 0 : index
    %53 = vector.load %arg6[%c0_19, %c0_20, %c0_21] : memref<1x1x128xf32, #tpu.memory_space<vmem>>, vector<1x1x128xf32>
    %54 = vector.shape_cast %52 : vector<1x128xf32> to vector<1x1x128xf32>
    %55 = arith.addf %53, %54 : vector<1x1x128xf32>
    %c0_22 = arith.constant 0 : index
    %c0_23 = arith.constant 0 : index
    %c0_24 = arith.constant 0 : index
    %56 = vector.load %arg6[%c0_22, %c0_23, %c0_24] : memref<1x1x128xf32, #tpu.memory_space<vmem>>, vector<1x1x128xf32>
    tpu.vector_store %arg6[%c0_22, %c0_23, %c0_24], %55 {strides = array<i32>} : memref<1x1x128xf32, #tpu.memory_space<vmem>>, vector<1x1x128xf32>,
    return
  }
  func.func @transform_0(%arg0: i32, %arg1: i32) -> (i32, i32) {
    %c0_i32 = arith.constant 0 : i32
    %c0_i32_0 = arith.constant 0 : i32
    return %arg0, %c0_i32 : i32, i32
  }
  func.func @transform_1(%arg0: i32, %arg1: i32) -> (i32, i32) {
    %c0_i32 = arith.constant 0 : i32
    %c0_i32_0 = arith.constant 0 : i32
    return %arg1, %c0_i32 : i32, i32
  }
  func.func @transform_2(%arg0: i32, %arg1: i32) -> (i32, i32) {
    %c0_i32 = arith.constant 0 : i32
    %c0_i32_0 = arith.constant 0 : i32
    return %arg0, %c0_i32 : i32, i32
  }
  func.func @transform_3(%arg0: i32, %arg1: i32) -> (i32, i32) {
    %c0_i32 = arith.constant 0 : i32
    %c0_i32_0 = arith.constant 0 : i32
    return %c0_i32, %arg1 : i32, i32
  }
  func.func @transform_4(%arg0: i32, %arg1: i32) -> (i32, i32, i32) {
    %c0_i32 = arith.constant 0 : i32
    %c0_i32_0 = arith.constant 0 : i32
    %c0_i32_1 = arith.constant 0 : i32
    return %arg0, %c0_i32, %c0_i32_0 : i32, i32, i32
  }
}

</mosaic_0001>

<bundles_post_ra>
// kernel: tpu_custom_call.1
= control target key start
LH: loop header
LB: loop body
LE: loop exit
PB: predicated region body
PF: predicated region fallthrough
CT: control target
= control target key end

     0   :  { %9 = vsyncpa [#allocation3], 0  ;;  %s1361_s0 = inlined_call_operand.hbm [shape: f32[128,128], index: 0, kind: input, shape index: {}]   ;;  %s1362_s1 = inlined_call_operand.hbm [shape: f32[128,128], index: 1, kind: input, shape index: {}]   ;;  %s1363_s2 = inlined_call_operand.hbm [shape: s32[128,1], index: 2, kind: input, shape index: {}]   ;;  %s1364_s3 = inlined_call_operand.hbm [shape: s32[1,128], index: 3, kind: input, shape index: {}]   ;;  %s1365_s4 = inlined_call_operand.hbm [shape: f32[1,1,128], index: 4, kind: output, shape index: {}]  }
   0x1   :  { %10 = vsyncpa [#allocation6], 0 }
   0x2   :  { %11 = vsyncpa [#allocation9], 0 }
   0x3   :  { %12 = vsyncpa [#allocation4], 0  ;;  %s1085_s15 = smov [#allocation5]   ;;  %s1086_s17 = smov [#allocation2]  }
   0x4   :  { %s30_s16 = sshll.u32 %s1085_s15, 4  ;;  %s18_s18 = sshll.u32 %s1086_s17, 4  ;;  %s31_s16 = int_to_ptr.vmem [resolvable:$true] %s30_s16  ;;  %s1119_s18 = int_to_ptr.vmem [resolvable:$true] %s18_s18 }
   0x5   :  { %s967_s21 = scalar_lea.hbm %s1362_s1, 2048 }
   0x6   :  { %p968_p0 = scmp.ne.s32.totalorder %s1362_s1, %s967_s21  ;;  %p971_p1 = scmp.lt.u32.totalorder %s967_s21, %s1362_s1 }
   0x8   :  { %p973_p2 = pnand %p971_p1, %p968_p0 }
   0xa   :  { %976 = shalt.err (!%p973_p2)
}
   0xb   :  { %s977_s26 = scalar_lea.vmem %s31_s16, 2048  ;;  %p982_p4 = scmp.lt.s32.totalorder %s31_s16, %s31_s16 }
   0xc   :  { %p978_p3 = scmp.ne.s32.totalorder %s31_s16, %s977_s26  ;;  %p983_p5 = scmp.lt.s32.totalorder %s977_s26, %s977_s26 }
   0xe   :  { %p984_p6 = por %p983_p5, %p982_p4 }
  0x10   :  { %p985_p7 = pnand %p984_p6, %p978_p3 }
  0x12   :  { %988 = shalt.err (!%p985_p7)
}
  0x13   :  { %s1087_s27 = smov 128   ;;  %s1088_s28 = smov 8  }
  0x14   :  { %36 = dma.hbm_to_vmem [thread:$0]  %s1362_s1, 2048, %s31_s16, [#allocation6], %s1087_s27, %s1087_s27, %s1088_s28  }
  0x15   :  { %s989_s7 = scalar_lea.hbm %s1361_s0, 2048 }
  0x16   :  { %p990_p8 = scmp.ne.s32.totalorder %s1361_s0, %s989_s7  ;;  %p993_p9 = scmp.lt.u32.totalorder %s989_s7, %s1361_s0 }
  0x18   :  { %p995_p10 = pnand %p993_p9, %p990_p8 }
  0x1a   :  { %998 = shalt.err (!%p995_p10)
}
  0x1b   :  { %s999_s12 = scalar_lea.vmem %s1119_s18, 2048  ;;  %p1004_p12 = scmp.lt.s32.totalorder %s1119_s18, %s1119_s18 }
  0x1c   :  { %p1000_p11 = scmp.ne.s32.totalorder %s1119_s18, %s999_s12  ;;  %p1005_p13 = scmp.lt.s32.totalorder %s999_s12, %s999_s12 }
  0x1e   :  { %p1006_p0 = por %p1005_p13, %p1004_p12 }
  0x20   :  { %p1007_p1 = pnand %p1006_p0, %p1000_p11 }
  0x22   :  { %1010 = shalt.err (!%p1007_p1)
}
  0x23   :  { %24 = dma.hbm_to_vmem [thread:$0]  %s1361_s0, 2048, %s1119_s18, [#allocation3], %s1087_s27, %s1087_s27, %s1088_s28  }
  0x24   :  { %s1089_s14 = smov [#allocation7]   ;;  %s1090_s16 = smov [#allocation8]  }
  0x25   :  { %s42_s15 = sshll.u32 %s1089_s14, 4  ;;  %s55_s17 = sshll.u32 %s1090_s16, 4  ;;  %s43_s15 = int_to_ptr.vmem [resolvable:$true] %s42_s15  ;;  %s56_s17 = int_to_ptr.vmem [resolvable:$true] %s55_s17 }
  0x26   :  { %s1011_s21 = scalar_lea.hbm %s1363_s2, 2048 }
  0x27   :  { %p1012_p2 = scmp.ne.s32.totalorder %s1363_s2, %s1011_s21  ;;  %p1015_p3 = scmp.lt.u32.totalorder %s1011_s21, %s1363_s2 }
  0x29   :  { %p1017_p4 = pnand %p1015_p3, %p1012_p2 }
  0x2b   :  { %1020 = shalt.err (!%p1017_p4)
}
  0x2c   :  { %s1021_s0 = scalar_lea.vmem %s43_s15, 2048  ;;  %p1026_p6 = scmp.lt.s32.totalorder %s43_s15, %s43_s15 }
  0x2d   :  { %p1022_p5 = scmp.ne.s32.totalorder %s43_s15, %s1021_s0  ;;  %p1027_p7 = scmp.lt.s32.totalorder %s1021_s0, %s1021_s0 }
  0x2f   :  { %p1028_p8 = por %p1027_p7, %p1026_p6 }
  0x31   :  { %p1029_p9 = pnand %p1028_p8, %p1022_p5 }
  0x33   :  { %1032 = shalt.err (!%p1029_p9)
}
  0x34   :  { %48 = dma.hbm_to_vmem [thread:$0]  %s1363_s2, 2048, %s43_s15, [#allocation6], %s1087_s27, %s1087_s27, %s1088_s28  }
  0x35   :  { %s1033_s5 = scalar_lea.hbm %s1364_s3, 16 }
  0x36   :  { %p1034_p10 = scmp.ne.s32.totalorder %s1364_s3, %s1033_s5  ;;  %p1037_p11 = scmp.lt.u32.totalorder %s1033_s5, %s1364_s3 }
  0x38   :  { %p1039_p12 = pnand %p1037_p11, %p1034_p10 }
  0x3a   :  { %1042 = shalt.err (!%p1039_p12)
}
  0x3b   :  { %s1043_s10 = scalar_lea.vmem %s56_s17, 16  ;;  %s1047_s11 = scalar_lea.vmem %s56_s17, 32 }
  0x3c   :  { %p1044_p13 = scmp.ne.s32.totalorder %s56_s17, %s1043_s10  ;;  %p1048_p0 = scmp.lt.s32.totalorder %s56_s17, %s56_s17 }
  0x3d   :  { %p1049_p1 = scmp.lt.s32.totalorder %s1047_s11, %s1043_s10 }
  0x3f   :  { %p1050_p2 = por %p1049_p1, %p1048_p0 }
  0x41   :  { %p1051_p3 = pnand %p1050_p2, %p1044_p13 }
  0x43   :  { %1054 = shalt.err (!%p1051_p3)
}
  0x44   :  { %58 = dma.hbm_to_vmem [thread:$0]  %s1364_s3, 16, %s56_s17, [#allocation9]  }
  0x45   :  { %1077 = dma.done.wait [#allocation3], 2048  }
  0x46   :  { %1078 = vsyncadd [#allocation3], 4294965248 }
  0x47   :  { %1079 = dma.done.wait [#allocation6], 4096  }
  0x48   :  { %1080 = vsyncadd [#allocation6], 4294963200 }
  0x49   :  { %1081 = dma.done.wait [#allocation9], 16  }
  0x4a   :  { %1082 = vsyncadd [#allocation9], 4294967280  ;;  %v1183_v0 = vld [vmem:[#allocation5] sm:$0xff]  ;;  %v1185_v1 = vld [vmem:[#allocation5 + $0x10] sm:$0xff]  ;;  %s1093_s3 = smov [#allocation10]  }
  0x4b   :  { %v1187_v2 = vld [vmem:[#allocation5 + $0x8] sm:$0xff]  ;;  %v188_v3 = vmul.f32 %v1183_v0, %v1183_v0  ;;  %v190_v4 = vmul.f32 %v1185_v1, %v1185_v1  ;;  %v1193_v5 = vld [vmem:[#allocation5 + $0x18] sm:$0xff]  ;;  %v1201_v9 = vld [vmem:[#allocation5 + $0x20] sm:$0xff]  ;;  %s729_s28 = sshll.u32 %s1093_s3, 4  ;;  %s730_s28 = int_to_ptr.vmem [resolvable:$true] %s729_s28 }
  0x4c   :  { %v189_v6 = vmul.f32 %v1187_v2, %v1187_v2  ;;  %v191_v7 = vmul.f32 %v1193_v5, %v1193_v5  ;;  %v1199_v8 = vld [vmem:[#allocation5 + $0x28] sm:$0xff]  ;;  %v192_v11 = vmul.f32 %v1201_v9, %v1201_v9  ;;  %v1207_v12 = vld [vmem:[#allocation5 + $0x38] sm:$0xff]  ;;  %v1209_v13 = vld [vmem:[#allocation5 + $0x30] sm:$0xff]  ;;  %s1055_s12 = scalar_lea.vmem %s730_s28, 16  ;;  %s1059_s1 = scalar_lea.vmem %s730_s28, 32 }
  0x4d   :  { %204 = vadd.xlane.f32.xlu0 %v188_v3  ;;  %208 = vadd.xlane.f32.xlu1 %v190_v4  ;;  %v193_v10 = vmul.f32 %v1199_v8, %v1199_v8  ;;  %v195_v14 = vmul.f32 %v1207_v12, %v1207_v12  ;;  %v194_v15 = vmul.f32 %v1209_v13, %v1209_v13  ;;  %v1215_v16 = vld [vmem:[#allocation5 + $0x48] sm:$0xff]  ;;  %v1217_v17 = vld [vmem:[#allocation5 + $0x40] sm:$0xff]  ;;  %v1223_v20 = vld [vmem:[#allocation5 + $0x58] sm:$0xff]  ;;  %v1091_v4 = vmov 0   ;;  %p1056_p4 = scmp.ne.s32.totalorder %s730_s28, %s1055_s12  ;;  %p1060_p5 = scmp.lt.s32.totalorder %s730_s28, %s730_s28 }
  0x4e   :  { %v197_v18 = vmul.f32 %v1215_v16, %v1215_v16  ;;  %v196_v19 = vmul.f32 %v1217_v17, %v1217_v17  ;;  %v1225_v21 = vld [vmem:[#allocation5 + $0x50] sm:$0xff]  ;;  %v199_v22 = vmul.f32 %v1223_v20, %v1223_v20  ;;  %v1231_v24 = vld [vmem:[#allocation5 + $0x68] sm:$0xff]  ;;  %v1233_v25 = vld [vmem:[#allocation5 + $0x60] sm:$0xff]  ;;  %902 = vset.pattern.permute.xlu0 %v1091_v4  ;;  %p1061_p6 = scmp.lt.s32.totalorder %s1059_s1, %s1055_s12 }
  0x4f   :  { %v198_v23 = vmul.f32 %v1225_v21, %v1225_v21  ;;  %v201_v26 = vmul.f32 %v1231_v24, %v1231_v24  ;;  %v200_v27 = vmul.f32 %v1233_v25, %v1233_v25  ;;  %v1239_v28 = vld [vmem:[#allocation5 + $0x78] sm:$0xff]  ;;  %v1241_v29 = vld [vmem:[#allocation5 + $0x70] sm:$0xff]  ;;  %v1247_v32 = vld [vmem:[#allocation2 + $0x8] sm:$0xff] }
  0x50   :  { %v203_v30 = vmul.f32 %v1239_v28, %v1239_v28  ;;  %v202_v31 = vmul.f32 %v1241_v29, %v1241_v29  ;;  %v1249_v33 = vld [vmem:[#allocation2] sm:$0xff]  ;;  %v109_v34 = vmul.f32 %v1247_v32, %v1247_v32  ;;  %v1255_v36 = vld [vmem:[#allocation2 + $0x48] sm:$0xff]  ;;  %v1263_v40 = vld [vmem:[#allocation2 + $0x50] sm:$0xff]  ;;  %p1062_p7 = por %p1061_p6, %p1060_p5 }
  0x51   :  { %206 = vadd.xlane.f32.xlu0 %v189_v6  ;;  %210 = vadd.xlane.f32.xlu1 %v191_v7  ;;  %v108_v35 = vmul.f32 %v1249_v33, %v1249_v33  ;;  %v1257_v37 = vld [vmem:[#allocation2 + $0x40] sm:$0xff]  ;;  %v117_v38 = vmul.f32 %v1255_v36, %v1255_v36  ;;  %v1265_v41 = vld [vmem:[#allocation2 + $0x10] sm:$0xff]  ;;  %v118_v42 = vmul.f32 %v1263_v40, %v1263_v40  ;;  %v1271_v44 = vld [vmem:[#allocation2 + $0x58] sm:$0xff] }
  0x52   :  { %v116_v39 = vmul.f32 %v1257_v37, %v1257_v37  ;;  %v110_v43 = vmul.f32 %v1265_v41, %v1265_v41  ;;  %v1273_v45 = vld [vmem:[#allocation2 + $0x18] sm:$0xff]  ;;  %v119_v46 = vmul.f32 %v1271_v44, %v1271_v44  ;;  %v1279_v48 = vld [vmem:[#allocation2 + $0x60] sm:$0xff]  ;;  %v1287_v52 = vld [vmem:[#allocation2 + $0x68] sm:$0xff]  ;;  %p1063_p8 = pnand %p1062_p7, %p1056_p4 }
  0x53   :  { %v111_v47 = vmul.f32 %v1273_v45, %v1273_v45  ;;  %v1281_v49 = vld [vmem:[#allocation2 + $0x20] sm:$0xff]  ;;  %v120_v50 = vmul.f32 %v1279_v48, %v1279_v48  ;;  %v1289_v53 = vld [vmem:[#allocation2 + $0x28] sm:$0xff]  ;;  %v121_v54 = vmul.f32 %v1287_v52, %v1287_v52  ;;  %v1295_v56 = vld [vmem:[#allocation2 + $0x70] sm:$0xff] }
  0x54   :  { %v112_v51 = vmul.f32 %v1281_v49, %v1281_v49  ;;  %v113_v55 = vmul.f32 %v1289_v53, %v1289_v53  ;;  %v1297_v57 = vld [vmem:[#allocation2 + $0x30] sm:$0xff]  ;;  %v122_v58 = vmul.f32 %v1295_v56, %v1295_v56  ;;  %v1303_v60 = vld [vmem:[#allocation2 + $0x78] sm:$0xff]  ;;  %v445_v3 = vld [vmem:[#allocation7] sm:$0xff] }
  0x55   :  { %214 = vadd.xlane.f32.xlu1 %v193_v10  ;;  %212 = vadd.xlane.f32.xlu0 %v192_v11  ;;  %v114_v59 = vmul.f32 %v1297_v57, %v1297_v57  ;;  %v1305_v61 = vld [vmem:[#allocation2 + $0x38] sm:$0xff]  ;;  %v123_v62 = vmul.f32 %v1303_v60, %v1303_v60 }
  0x56   :  { %v115_v63 = vmul.f32 %v1305_v61, %v1305_v61 }
  0x59   :  { %218 = vadd.xlane.f32.xlu1 %v195_v14  ;;  %216 = vadd.xlane.f32.xlu0 %v194_v15 }
  0x5d   :  { %222 = vadd.xlane.f32.xlu1 %v197_v18  ;;  %220 = vadd.xlane.f32.xlu0 %v196_v19 }
  0x61   :  { %226 = vadd.xlane.f32.xlu1 %v199_v22  ;;  %224 = vadd.xlane.f32.xlu0 %v198_v23 }
  0x65   :  { %230 = vadd.xlane.f32.xlu1 %v201_v26  ;;  %228 = vadd.xlane.f32.xlu0 %v200_v27 }
  0x69   :  { %234 = vadd.xlane.f32.xlu1 %v203_v30  ;;  %232 = vadd.xlane.f32.xlu0 %v202_v31 }
  0x6d   :  { %126 = vadd.xlane.f32.xlu1 %v109_v34  ;;  %124 = vadd.xlane.f32.xlu0 %v108_v35 }
  0x71   :  { %142 = vadd.xlane.f32.xlu1 %v117_v38  ;;  %140 = vadd.xlane.f32.xlu0 %v116_v39 }
  0x75   :  { %144 = vadd.xlane.f32.xlu1 %v118_v42  ;;  %128 = vadd.xlane.f32.xlu0 %v110_v43 }
  0x79   :  { %146 = vadd.xlane.f32.xlu1 %v119_v46  ;;  %130 = vadd.xlane.f32.xlu0 %v111_v47 }
  0x7d   :  { %148 = vadd.xlane.f32.xlu1 %v120_v50  ;;  %132 = vadd.xlane.f32.xlu0 %v112_v51 }
  0x81   :  { %150 = vadd.xlane.f32.xlu1 %v121_v54  ;;  %134 = vadd.xlane.f32.xlu0 %v113_v55 }
  0x85   :  { %152 = vadd.xlane.f32.xlu1 %v122_v58  ;;  %136 = vadd.xlane.f32.xlu0 %v114_v59 }
  0x89   :  { %154 = vadd.xlane.f32.xlu1 %v123_v62  ;;  %138 = vadd.xlane.f32.xlu0 %v115_v63 }
  0x9f   :  { %463 = vperm.xlu0 %902, %v445_v3  }
  0xda   :  { %v205_v6 = vpop.xlane.xlu0 %204  ;;  %v209_v7 = vpop.xlane.xlu1 %208 }
  0xdb   :  { %v236_v10 = vmax.f32 %v205_v6, 1e-24  ;;  %v238_v11 = vmax.f32 %v209_v7, 1e-24 }
  0xdd   :  { %903 = vrsqrt.f32 %v238_v11 }
  0xde   :  { %v207_v14 = vpop.xlane.xlu0 %206  ;;  %v211_v15 = vpop.xlane.xlu1 %210  ;;  %905 = vrsqrt.f32 %v236_v10 }
  0xdf   :  { %v237_v18 = vmax.f32 %v207_v14, 1e-24  ;;  %v239_v19 = vmax.f32 %v211_v15, 1e-24 }
  0xe1   :  { %907 = vrsqrt.f32 %v237_v18 }
  0xe2   :  { %909 = vrsqrt.f32 %v239_v19  ;;  %v215_v22 = vpop.xlane.xlu1 %214  ;;  %v213_v23 = vpop.xlane.xlu0 %212 }
  0xe3   :  { %v241_v26 = vmax.f32 %v215_v22, 1e-24  ;;  %v240_v27 = vmax.f32 %v213_v23, 1e-24 }
  0xe5   :  { %911 = vrsqrt.f32 %v241_v26 }
  0xe6   :  { %913 = vrsqrt.f32 %v240_v27  ;;  %v219_v30 = vpop.xlane.xlu1 %218  ;;  %v217_v31 = vpop.xlane.xlu0 %216 }
  0xe7   :  { %v904_v34 = vpop.eup %903  ;;  %v243_v35 = vmax.f32 %v219_v30, 1e-24  ;;  %v242_v39 = vmax.f32 %v217_v31, 1e-24 }
  0xe8   :  { %v906_v38 = vpop.eup %905  ;;  %v286_v47 = vmul.f32 %v904_v34, %v1185_v1 }
  0xe9   :  { %v284_v51 = vmul.f32 %v906_v38, %v1183_v0  ;;  %915 = vrsqrt.f32 %v243_v35 }
  0xea   :  { %v223_v42 = vpop.xlane.xlu1 %222  ;;  %v221_v43 = vpop.xlane.xlu0 %220  ;;  %917 = vrsqrt.f32 %v242_v39 }
  0xeb   :  { %v908_v46 = vpop.eup %907  ;;  %v245_v6 = vmax.f32 %v223_v42, 1e-24  ;;  %v244_v1 = vmax.f32 %v221_v43, 1e-24 }
  0xec   :  { %v910_v50 = vpop.eup %909  ;;  %v285_v54 = vmul.f32 %v908_v46, %v1187_v2 }
  0xed   :  { %v287_v55 = vmul.f32 %v910_v50, %v1193_v5  ;;  %919 = vrsqrt.f32 %v245_v6 }
  0xee   :  { %v845_v58 = vpack.c.bf16 %v285_v54, %v284_v51  ;;  %v227_v59 = vpop.xlane.xlu1 %226  ;;  %v225_v62 = vpop.xlane.xlu0 %224  ;;  %921 = vrsqrt.f32 %v244_v1 }
  0xef   :  { %v912_v63 = vpop.eup %911  ;;  %v849_v3 = vpack.c.bf16 %v287_v55, %v286_v47  ;;  %v247_v19 = vmax.f32 %v227_v59, 1e-24  ;;  %v246_v22 = vmax.f32 %v225_v62, 1e-24 }
  0xf0   :  { %v914_v4 = vpop.eup %913  ;;  %846 = vmatprep.subr.bf16.mxu0 %v845_v58  ;;  %877 = vmatprep.subr.bf16.mxu1 %v845_v58  ;;  %v289_v2 = vmul.f32 %v912_v63, %v1199_v8 }
  0xf1   :  { %848 = vmatpush3.bf16.xpose.msra.mxu0 %v845_v58  ;;  %885 = vmatpush3.bf16.xpose.msra.mxu1 %v845_v58  ;;  %v288_v0 = vmul.f32 %v914_v4, %v1201_v9  ;;  %923 = vrsqrt.f32 %v247_v19 }
  0xf2   :  { %850 = vmatprep.subr.bf16.mxu0 %v849_v3  ;;  %878 = vmatprep.subr.bf16.mxu1 %v849_v3  ;;  %v231_v5 = vpop.xlane.xlu1 %230  ;;  %v229_v7 = vpop.xlane.xlu0 %228  ;;  %925 = vrsqrt.f32 %v246_v22 }
  0xf3   :  { %v916_v10 = vpop.eup %915  ;;  %v853_v11 = vpack.c.bf16 %v289_v2, %v288_v0  ;;  %v249_v42 = vmax.f32 %v231_v5, 1e-24 }
  0xf4   :  { %v918_v18 = vpop.eup %917  ;;  %v291_v9 = vmul.f32 %v916_v10, %v1207_v12 }
  0xf5   :  { %v290_v23 = vmul.f32 %v918_v18, %v1209_v13  ;;  %v248_v13 = vmax.f32 %v229_v7, 1e-24 }
  0xf6   :  { %v235_v14 = vpop.xlane.xlu1 %234  ;;  %v233_v15 = vpop.xlane.xlu0 %232 }
  0xf7   :  { %v920_v30 = vpop.eup %919  ;;  %v857_v31 = vpack.c.bf16 %v291_v9, %v290_v23  ;;  %v251_v58 = vmax.f32 %v235_v14, 1e-24  ;;  %v250_v59 = vmax.f32 %v233_v15, 1e-24 }
  0xf8   :  { %v922_v35 = vpop.eup %921  ;;  %v293_v43 = vmul.f32 %v920_v30, %v1215_v16 }
  0xf9   :  { %852 = vmatpush3.bf16.xpose.msra.mxu0 %v849_v3  ;;  %886 = vmatpush3.bf16.xpose.msra.mxu1 %v849_v3  ;;  %v292_v12 = vmul.f32 %v922_v35, %v1217_v17 }
  0xfa   :  { %854 = vmatprep.subr.bf16.mxu0 %v853_v11  ;;  %879 = vmatprep.subr.bf16.mxu1 %v853_v11  ;;  %v1319_v8 = vpop.xlane.xlu1 %126  ;;  %v125_v26 = vpop.xlane.xlu0 %124 }
  0xfb   :  { %v156_v27 = vmax.f32 %v125_v26, 1e-24  ;;  %v924_v47 = vpop.eup %923  ;;  %v861_v50 = vpack.c.bf16 %v293_v43, %v292_v12 }
  0xfc   :  { %v926_v54 = vpop.eup %925  ;;  %v295_v16 = vmul.f32 %v924_v47, %v1223_v20 }
  0xfd   :  { %927 = vrsqrt.f32 %v156_v27  ;;  %v294_v17 = vmul.f32 %v926_v54, %v1225_v21 }
  0xfe   :  { %v141_v34 = vpop.xlane.xlu0 %140  ;;  %v1321_v38 = vpop.xlane.xlu1 %142 }
  0xff   :  { %v164_v39 = vmax.f32 %v141_v34, 1e-24  ;;  %v865_v0 = vpack.c.bf16 %v295_v16, %v294_v17  ;;  %v165_v18 = vmax.f32 %v1321_v38, 1e-24 }
 0x101   :  { %856 = vmatpush3.bf16.xpose.msra.mxu0 %v853_v11  ;;  %887 = vmatpush3.bf16.xpose.msra.mxu1 %v853_v11  ;;  %929 = vrsqrt.f32 %v164_v39 }
 0x102   :  { %858 = vmatprep.subr.bf16.mxu0 %v857_v31  ;;  %880 = vmatprep.subr.bf16.mxu1 %v857_v31  ;;  %931 = vrsqrt.f32 %v249_v42  ;;  %v145_v46 = vpop.xlane.xlu1 %144  ;;  %v129_v51 = vpop.xlane.xlu0 %128 }
 0x103   :  { %933 = vrsqrt.f32 %v248_v13  ;;  %v166_v22 = vmax.f32 %v145_v46, 1e-24 }
 0x104   :  { %935 = vrsqrt.f32 %v251_v58 }
 0x105   :  { %937 = vrsqrt.f32 %v250_v59 }
 0x106   :  { %v147_v63 = vpop.xlane.xlu1 %146  ;;  %v131_v4 = vpop.xlane.xlu0 %130 }
 0x107   :  { %v928_v55 = vpop.eup %927  ;;  %v167_v23 = vmax.f32 %v147_v63, 1e-24  ;;  %v159_v26 = vmax.f32 %v131_v4, 1e-24 }
 0x108   :  { %v268_v62 = vmul.f32 %v928_v55, %v1249_v33 }
 0x109   :  { %860 = vmatpush3.bf16.xpose.msra.mxu0 %v857_v31  ;;  %888 = vmatpush3.bf16.xpose.msra.mxu1 %v857_v31 }
 0x10a   :  { %862 = vmatprep.subr.bf16.mxu0 %v861_v50  ;;  %881 = vmatprep.subr.bf16.mxu1 %v861_v50  ;;  %v149_v33 = vpop.xlane.xlu1 %148  ;;  %v133_v5 = vpop.xlane.xlu0 %132 }
 0x10b   :  { %821 = vmatprep.mubr.f32.mxu0 %v268_v62  ;;  %v930_v3 = vpop.eup %929  ;;  %v168_v31 = vmax.f32 %v149_v33, 1e-24  ;;  %v645_v33 = vlaneseq }
 0x10c   :  { %v276_v6 = vmul.f32 %v930_v3, %v1257_v37  ;;  %v932_v1 = vpop.eup %931  ;;  %v157_v37 = vmax.f32 %v1319_v8, 1e-24  ;;  %v160_v8 = vmax.f32 %v133_v5, 1e-24 }
 0x10d   :  { %v934_v2 = vpop.eup %933  ;;  %v297_v20 = vmul.f32 %v932_v1, %v1231_v24  ;;  %v158_v24 = vmax.f32 %v129_v51, 1e-24 }
 0x10e   :  { %833 = vmatprep.mubr.f32.mxu1 %v276_v6  ;;  %v296_v21 = vmul.f32 %v934_v2, %v1233_v25  ;;  %v936_v7 = vpop.eup %935  ;;  %v151_v14 = vpop.xlane.xlu1 %150  ;;  %939 = vrsqrt.f32 %v157_v37 }
 0x10f   :  { %v938_v11 = vpop.eup %937  ;;  %v135_v15 = vpop.xlane.xlu0 %134  ;;  %v299_v25 = vmul.f32 %v936_v7, %v1239_v28  ;;  %941 = vrsqrt.f32 %v165_v18  ;;  %v169_v34 = vmax.f32 %v151_v14, 1e-24  ;;  %v646_v7 = vand.u32 127, %v645_v33 }
 0x110   :  { %v869_v10 = vpack.c.bf16 %v297_v20, %v296_v21  ;;  %v298_v19 = vmul.f32 %v938_v11, %v1241_v29  ;;  %943 = vrsqrt.f32 %v166_v22  ;;  %v161_v28 = vmax.f32 %v135_v15, 1e-24 }
 0x111   :  { %864 = vmatpush3.bf16.xpose.msra.mxu0 %v861_v50  ;;  %889 = vmatpush3.bf16.xpose.msra.mxu1 %v861_v50  ;;  %945 = vrsqrt.f32 %v158_v24  ;;  %vm666_vm1 = vcmp.lt.s32.totalorder %v646_v7, 8 }
 0x112   :  { %866 = vmatprep.subr.bf16.mxu0 %v865_v0  ;;  %882 = vmatprep.subr.bf16.mxu1 %v865_v0  ;;  %v153_v9 = vpop.xlane.xlu1 %152  ;;  %v873_v27 = vpack.c.bf16 %v299_v25, %v298_v19  ;;  %947 = vrsqrt.f32 %v167_v23 }
 0x113   :  { %v137_v30 = vpop.xlane.xlu0 %136  ;;  %949 = vrsqrt.f32 %v159_v26  ;;  %v170_v29 = vmax.f32 %v153_v9, 1e-24 }
 0x114   :  { %951 = vrsqrt.f32 %v168_v31  ;;  %v162_v38 = vmax.f32 %v137_v30, 1e-24 }
 0x115   :  { %953 = vrsqrt.f32 %v160_v8 }
 0x116   :  { %v155_v35 = vpop.xlane.xlu1 %154  ;;  %955 = vrsqrt.f32 %v169_v34 }
 0x117   :  { %v139_v39 = vpop.xlane.xlu0 %138  ;;  %957 = vrsqrt.f32 %v161_v28  ;;  %v171_v42 = vmax.f32 %v155_v35, 1e-24 }
 0x118   :  { %v940_v13 = vpop.eup %939  ;;  %959 = vrsqrt.f32 %v170_v29  ;;  %v163_v12 = vmax.f32 %v139_v39, 1e-24 }
 0x119   :  { %868 = vmatpush3.bf16.xpose.msra.mxu0 %v865_v0  ;;  %890 = vmatpush3.bf16.xpose.msra.mxu1 %v865_v0  ;;  %v942_v43 = vpop.eup %941  ;;  %961 = vrsqrt.f32 %v162_v38  ;;  %v269_v62 = vmul.f32 %v940_v13, %v1247_v32 }
 0x11a   :  { %870 = vmatprep.subr.bf16.mxu0 %v869_v10  ;;  %883 = vmatprep.subr.bf16.mxu1 %v869_v10  ;;  %v944_v46 = vpop.eup %943  ;;  %963 = vrsqrt.f32 %v171_v42  ;;  %v277_v17 = vmul.f32 %v942_v43, %v1255_v36 }
 0x11b   :  { %v946_v47 = vpop.eup %945  ;;  %965 = vrsqrt.f32 %v163_v12  ;;  %v278_v58 = vmul.f32 %v944_v46, %v1263_v40 }
 0x11c   :  { %v948_v50 = vpop.eup %947  ;;  %v270_v55 = vmul.f32 %v946_v47, %v1265_v41 }
 0x11d   :  { %v950_v51 = vpop.eup %949  ;;  %v279_v4 = vmul.f32 %v948_v50, %v1271_v44 }
 0x11e   :  { %v952_v54 = vpop.eup %951  ;;  %v271_v3 = vmul.f32 %v950_v51, %v1273_v45  ;;  %v464_v21 = vpop.permute.xlu0 %463 }
 0x11f   :  { %v954_v59 = vpop.eup %953  ;;  %v280_v40 = vmul.f32 %v952_v54, %v1279_v48 }
 0x120   :  { %v956_v16 = vpop.eup %955  ;;  %v272_v41 = vmul.f32 %v954_v59, %v1281_v49 }
 0x121   :  { %872 = vmatpush3.bf16.xpose.msra.mxu0 %v869_v10  ;;  %891 = vmatpush3.bf16.xpose.msra.mxu1 %v869_v10  ;;  %v958_v63 = vpop.eup %957  ;;  %v281_v36 = vmul.f32 %v956_v16, %v1287_v52  ;;  %v740_v52 = vld [vmem:[#allocation8] ss:$0 sm:$0xff] }
 0x122   :  { %874 = vmatprep.subr.bf16.mxu0 %v873_v27  ;;  %884 = vmatprep.subr.bf16.mxu1 %v873_v27  ;;  %v960_v6 = vpop.eup %959  ;;  %v273_v32 = vmul.f32 %v958_v63, %v1289_v53  ;;  %v1092_v53 = vmov 0.0   ;;  %v514_v20 = vadd.s32 %v740_v52, %v464_v21 }
 0x123   :  { %v962_v1 = vpop.eup %961  ;;  %v282_v45 = vmul.f32 %v960_v6, %v1295_v56  ;;  %75 = vst [vmem:[#allocation10] sm:$0x1] %v1092_v53 }
 0x124   :  { %v964_v0 = vpop.eup %963  ;;  %v274_v44 = vmul.f32 %v962_v1, %v1297_v57  ;;  %vm530_vm0 = vcmp.ne.s32.totalorder %v514_v20, 1 }
 0x125   :  { %v966_v2 = vpop.eup %965  ;;  %v283_v48 = vmul.f32 %v964_v0, %v1303_v60 }
 0x126   :  { %v275_v49 = vmul.f32 %v966_v2, %v1305_v61 }
 0x129   :  { %876 = vmatpush3.bf16.xpose.msra.mxu0 %v873_v27  ;;  %892 = vmatpush3.bf16.xpose.msra.mxu1 %v873_v27 }
 0x12a   :  { %v720_v38 = vld [vmem:[#allocation10] sm:$0x1] }
 0x130   :  { %822 = vmatmul.mubr.f32.vlgmr.msra.gmra.mrb[0].mxu0 %v269_v62  ;;  %834 = vmatmul.mubr.f32.vlgmr.msra.gmra.mrb[0].mxu1 %v277_v17 }
 0x131   :  { %824 = vmatprep.mubr.f32.mxu0 %v270_v55  ;;  %836 = vmatprep.mubr.f32.mxu1 %v278_v58 }
 0x134   :  { %825 = vmatmul.mubr.f32.gmra.mrb[2].mxu0 %v271_v3  ;;  %837 = vmatmul.mubr.f32.gmra.mrb[2].mxu1 %v279_v4 }
 0x135   :  { %827 = vmatprep.mubr.f32.mxu0 %v272_v41  ;;  %839 = vmatprep.mubr.f32.mxu1 %v280_v40 }
 0x138   :  { %828 = vmatmul.mubr.f32.gmra.mrb[4].mxu0 %v273_v32  ;;  %840 = vmatmul.mubr.f32.gmra.mrb[4].mxu1 %v281_v36 }
 0x139   :  { %830 = vmatprep.mubr.f32.mxu0 %v274_v44  ;;  %842 = vmatprep.mubr.f32.mxu1 %v282_v45 }
 0x13c   :  { %831 = vmatmul.mubr.f32.gmra.mrb[6].mxu0 %v275_v49  ;;  %843 = vmatmul.mubr.f32.gmra.mrb[6].mxu1 %v283_v48 }
 0x203   :  { %v823_v5 = vpop.f32.mrb[0].mxu0  ;;  %v835_v57 = vpop.f32.mrb[0].mxu1 }
 0x204   :  { %v366_v56 = vpop.f32.mrb[1].mxu0  ;;  %v406_v10 = vpop.f32.mrb[1].mxu1 }
 0x205   :  { %v741_v11 = vadd.f32 -0.3, %v366_v56  ;;  %v546_v61 = vsub.f32 1.0, %v366_v56 }
 0x207   :  { %v578_v14 = vmax.f32 %v741_v11, 0.0  ;;  %v826_v60 = vpop.f32.mrb[2].mxu0  ;;  %v838_v15 = vpop.f32.mrb[2].mxu1 }
 0x208   :  { %v376_v37 = vpop.f32.mrb[3].mxu0  ;;  %v416_v18 = vpop.f32.mrb[3].mxu1 }
 0x209   :  { %v594_v19 = vsel %vm530_vm0, %v546_v61, %v578_v14 }
 0x20a   :  { %v683_v25 = vsel %vm666_vm1, %v594_v19, 0.0 }
 0x20b   :  { %v714_v22 = vrot.slane %v683_v25, 4  ;;  %v829_v24 = vpop.f32.mrb[4].mxu0  ;;  %v841_v23 = vpop.f32.mrb[4].mxu1 }
 0x20c   :  { %v386_v9 = vpop.f32.mrb[5].mxu0  ;;  %v426_v26 = vpop.f32.mrb[5].mxu1 }
 0x20d   :  { %v715_v27 = vadd.f32 %v714_v22, %v683_v25 }
 0x20f   :  { %v716_v30 = vrot.slane %v715_v27, 2  ;;  %v832_v31 = vpop.f32.mrb[6].mxu0  ;;  %v844_v8 = vpop.f32.mrb[6].mxu1 }
 0x210   :  { %v396_v34 = vpop.f32.mrb[7].mxu0  ;;  %v436_v28 = vpop.f32.mrb[7].mxu1 }
 0x211   :  { %v717_v29 = vadd.f32 %v716_v30, %v715_v27 }
 0x213   :  { %v718_v35 = vrot.slane %v717_v29, 1 }
 0x215   :  { %v719_v39 = vadd.f32 %v718_v35, %v717_v29 }
 0x217   :  { %v721_v42 = vadd.f32 %v720_v38, %v719_v39 }
 0x219   :  { %722 = vst [vmem:[#allocation10] sm:$0x1] %v721_v42 }
 0x21a   :  { %1066 = shalt.err (!%p1063_p8)
}
 0x21b   :  { %s1067_s15 = scalar_lea.hbm %s1365_s4, 16 }
 0x21c   :  { %p1068_p9 = scmp.ne.s32.totalorder %s1365_s4, %s1067_s15  ;;  %p1071_p10 = scmp.lt.u32.totalorder %s1067_s15, %s1365_s4 }
 0x21e   :  { %p1073_p11 = pnand %p1071_p10, %p1068_p9 }
 0x220   :  { %1076 = shalt.err (!%p1073_p11)
}
 0x221   :  { %732 = dma.vmem_to_hbm [thread:$0]  %s730_s28, 16, %s1365_s4, [#allocation4]  }
 0x222   :  { %1083 = dma.done.wait [#allocation4], 16  }
 0x223   :  { %1084 = vsyncadd [#allocation4], 4294967280 }
 0x224   :  { %736 = vsyncpa [#allocation3], 1 }
 0x225   :  { %737 = vsyncpa [#allocation6], 1 }
 0x226   :  { %738 = vsyncpa [#allocation9], 1 }
 0x227   :  { %739 = vsyncpa [#allocation4], 1 }

</bundles_post_ra>
